<compile_context>
chip_gen: v7x
topology: tpu7x:2x2x1
jax: 0.10.0
libtpu: 0.0.40
codegen_flags: <defaults>
</compile_context>

<pallas_src>
import functools

import jax
import jax.numpy as jnp
from jax.experimental import pallas as pl
from jax.experimental.pallas import tpu as pltpu


# ----------------------------------------------------------------------------
# Packed-parameter layout: single f32 (288, 128) buffer.  Every tensor starts
# on an 8-row (sublane-tile) boundary and spans all 128 lanes; unused rows and
# lanes are zero.
#
#   rows [  0,   8)  w1   (state_size rows used, `hidden` lanes used)
#   rows [  8,  16)  b1   (row 8)
#   rows [ 16, 144)  w2   (full 128-row block; rows 16:16+hidden hold w2)
#   rows [144, 152)  b2   (row 144)
#   rows [152, 280)  w5   (full 128-row block; rows 152:152+hidden hold w5)
#   rows [280, 288)  b5   (row 280)
# ----------------------------------------------------------------------------
R_W1, R_B1 = 0, 8
R_W2, R_B2 = 16, 144
R_W5, R_B5 = 152, 280
PACK_ROWS = 288          # 288 x 128 x 4 B = 144 KiB  (trivial VMEM residency)
LANES = 128


def policy_kernel(x_ref, p_ref, o_ref, *, state_size, action_size):
    x = x_ref[...]                               # (B, state_size)

    # Whole-vreg, 8-row-aligned, full-128-lane parameter slices.
    w1 = p_ref[R_W1:R_W1 + state_size, :]        # (S, 128)
    b1 = p_ref[R_B1:R_B1 + 1, :]                 # (1, 128)
    w2 = p_ref[R_W2:R_W2 + LANES, :]             # (128, 128), rows >= hidden are 0
    b2 = p_ref[R_B2:R_B2 + 1, :]                 # (1, 128)
    w5 = p_ref[R_W5:R_W5 + LANES, :]             # (128, 128), rows >= hidden are 0
    b5 = p_ref[R_B5:R_B5 + 1, :]                 # (1, 128)

    # fc1 + ReLU   (padded lanes of w1/b1 are zero -> h1 lanes >= hidden are 0)
    h1 = jnp.maximum(jnp.dot(x, w1, preferred_element_type=jnp.float32) + b1, 0.0)
    # fc2 + ReLU
    h2 = jnp.maximum(jnp.dot(h1, w2, preferred_element_type=jnp.float32) + b2, 0.0)
    # fc5
    logits = jnp.dot(h2, w5, preferred_element_type=jnp.float32) + b5   # (B, 128)

    # Softmax over dim=0 (the batch axis), matching F.softmax(..., dim=0).
    # Computed full-lane-width (padded lanes hold logits == 0 -> harmless) with
    # an EXACT divide; only the real action lanes are stored.
    m = jnp.max(logits, axis=0, keepdims=True)
    e = jnp.exp(logits - m)
    s = jnp.sum(e, axis=0, keepdims=True)
    probs = e / s
    o_ref[...] = probs[:, :action_size].astype(o_ref.dtype)


def policy_forward_batched(states, packed_params, *, state_size, action_size):
    """states: (num_evals, batch, state_size) f32 -> (num_evals, batch, action_size).

    One grid step per independent evaluation; the packed weights stay resident
    in VMEM across all steps (constant index_map).  softmax(dim=0) is over the
    batch of ONE evaluation and is kept entirely inside a single block.
    """
    num_evals, batch, s = states.shape
    assert s == state_size
    kernel = functools.partial(
        policy_kernel, state_size=state_size, action_size=action_size)

    grid_spec = pltpu.PrefetchScalarGridSpec(
        num_scalar_prefetch=0,
        grid=(num_evals,),
        in_specs=[
            pl.BlockSpec((None, batch, state_size), lambda e: (e, 0, 0)),
            pl.BlockSpec((PACK_ROWS, LANES), lambda e: (0, 0)),   # resident
        ],
        out_specs=pl.BlockSpec((None, batch, action_size), lambda e: (e, 0, 0)),
    )
    return pl.pallas_call(
        kernel,
        out_shape=jax.ShapeDtypeStruct((num_evals, batch, action_size), jnp.float32),
        grid_spec=grid_spec,
        compiler_params=pltpu.CompilerParams(
            dimension_semantics=("parallel",)),   # v7x: both TCs split evals
    )(states, packed_params)


def policy_forward(state, packed_params, *, state_size, action_size):
    """Single evaluation: (batch, state_size) -> (batch, action_size)."""
    out = policy_forward_batched(
        state[None], packed_params,
        state_size=state_size, action_size=action_size)
    return out[0]


def init_params(key, state_size, action_size, hidden=12):
    """nn.Linear-style init (uniform +/- 1/sqrt(fan_in)); weights stored as
    (in_features, out_features)."""
    ks = jax.random.split(key, 6)

    def lin(kw, kb, fan_in, fan_out):
        bound = 1.0 / jnp.sqrt(jnp.float32(fan_in))
        w = jax.random.uniform(kw, (fan_in, fan_out), jnp.float32, -bound, bound)
        b = jax.random.uniform(kb, (1, fan_out), jnp.float32, -bound, bound)
        return w, b

    w1, b1 = lin(ks[0], ks[1], state_size, hidden)
    w2, b2 = lin(ks[2], ks[3], hidden, hidden)
    w5, b5 = lin(ks[4], ks[5], hidden, action_size)
    return (w1, b1, w2, b2, w5, b5)


def pack_params(params):
    """Pack all weights/biases once into the aligned (288, 128) f32 buffer."""
    w1, b1, w2, b2, w5, b5 = params
    s, h = w1.shape
    _, a = w5.shape
    assert s <= 8 and h <= LANES and a <= LANES

    packed = jnp.zeros((PACK_ROWS, LANES), jnp.float32)
    packed = packed.at[R_W1:R_W1 + s, 0:h].set(w1)
    packed = packed.at[R_B1, 0:h].set(b1.reshape(h))
    packed = packed.at[R_W2:R_W2 + h, 0:h].set(w2)
    packed = packed.at[R_B2, 0:h].set(b2.reshape(h))
    packed = packed.at[R_W5:R_W5 + h, 0:a].set(w5)
    packed = packed.at[R_B5, 0:a].set(b5.reshape(a))
    return packed


def policy_forward_ref(state, params):
    """Pure-JAX reference for one evaluation (softmax over dim=0, like torch)."""
    w1, b1, w2, b2, w5, b5 = params
    h1 = jnp.maximum(state @ w1 + b1, 0.0)
    h2 = jnp.maximum(h1 @ w2 + b2, 0.0)
    logits = h2 @ w5 + b5
    return jax.nn.softmax(logits, axis=0)


if __name__ == "__main__":
    key = jax.random.PRNGKey(0)
    k_state, k_params = jax.random.split(key)

    num_evals = 4
    batch = 8
    state_size = 4
    action_size = 2
    hidden = 12

    states = jax.random.normal(
        k_state, (num_evals, batch, state_size), dtype=jnp.float32)
    params = init_params(k_params, state_size, action_size, hidden)
    packed = pack_params(params)

    out = policy_forward_batched(
        states, packed, state_size=state_size, action_size=action_size)
    out = jax.block_until_ready(out)
    assert out.shape == (num_evals, batch, action_size)

    ref = jax.vmap(lambda s: policy_forward_ref(s, params))(states)
    assert jnp.allclose(out, ref, atol=2e-5, rtol=2e-5), (
        float(jnp.max(jnp.abs(out - ref))))

    # Single-evaluation path as well.
    out1 = jax.block_until_ready(
        policy_forward(states[0], packed,
                       state_size=state_size, action_size=action_size))
    assert jnp.allclose(out1, ref[0], atol=2e-5, rtol=2e-5)

    print("KERNEL_OK")
</pallas_src>

<mosaic_0001>
module attributes {stable_mosaic.version = 11 : i64} {
  func.func @policy_kernel(%arg0: i32, %arg1: memref<1x8x4xf32, #tpu.memory_space<vmem>>, %arg2: memref<288x128xf32, #tpu.memory_space<vmem>>, %arg3: memref<1x8x2xf32, #tpu.memory_space<vmem>>) attributes {dimension_semantics = [#tpu.dimension_semantics<parallel>], iteration_bounds = array<i64: 4>, scalar_prefetch = 0 : i64, scratch_operands = 0 : i64, tpu.core_type = #tpu.core_type<tc>, window_params = [{transform_indices = @transform_0, window_bounds = array<i64: 1, 8, 4>}, {pipeline_mode = #tpu.pipeline_mode<synchronous>, transform_indices = @transform_1, window_bounds = array<i64: 288, 128>}, {transform_indices = @transform_2, window_bounds = array<i64: 1, 8, 2>}]} {
    %c0 = arith.constant 0 : index
    %c0_0 = arith.constant 0 : index
    %c0_1 = arith.constant 0 : index
    %0 = vector.load %arg1[%c0, %c0_0, %c0_1] : memref<1x8x4xf32, #tpu.memory_space<vmem>>, vector<1x8x4xf32>
    %1 = vector.shape_cast %0 : vector<1x8x4xf32> to vector<8x4xf32>
    %c0_2 = arith.constant 0 : index
    %c0_3 = arith.constant 0 : index
    %2 = vector.load %arg2[%c0_2, %c0_3] : memref<288x128xf32, #tpu.memory_space<vmem>>, vector<4x128xf32>
    %c8 = arith.constant 8 : index
    %c0_4 = arith.constant 0 : index
    %3 = vector.load %arg2[%c8, %c0_4] : memref<288x128xf32, #tpu.memory_space<vmem>>, vector<1x128xf32>
    %c16 = arith.constant 16 : index
    %c0_5 = arith.constant 0 : index
    %4 = vector.load %arg2[%c16, %c0_5] : memref<288x128xf32, #tpu.memory_space<vmem>>, vector<128x128xf32>
    %c144 = arith.constant 144 : index
    %c0_6 = arith.constant 0 : index
    %5 = vector.load %arg2[%c144, %c0_6] : memref<288x128xf32, #tpu.memory_space<vmem>>, vector<1x128xf32>
    %c152 = arith.constant 152 : index
    %c0_7 = arith.constant 0 : index
    %6 = vector.load %arg2[%c152, %c0_7] : memref<288x128xf32, #tpu.memory_space<vmem>>, vector<128x128xf32>
    %c280 = arith.constant 280 : index
    %c0_8 = arith.constant 0 : index
    %7 = vector.load %arg2[%c280, %c0_8] : memref<288x128xf32, #tpu.memory_space<vmem>>, vector<1x128xf32>
    %cst = arith.constant dense<0.000000e+00> : vector<8x128xf32>
    %8 = tpu.matmul %1, %2, %cst {dimension_numbers = #tpu.dot_dimension_numbers<[1], [0], [0], [1], [0, 0, 1, 1], [], []>} : vector<8x4xf32>, vector<4x128xf32>, vector<8x128xf32> -> vector<8x128xf32>
    %9 = vector.broadcast %3 : vector<1x128xf32> to vector<8x128xf32>
    %10 = arith.addf %8, %9 : vector<8x128xf32>
    %cst_9 = arith.constant 0.000000e+00 : f32
    %11 = vector.broadcast %cst_9 : f32 to vector<8x128xf32>
    %12 = arith.maximumf %10, %11 : vector<8x128xf32>
    %cst_10 = arith.constant dense<0.000000e+00> : vector<8x128xf32>
    %13 = tpu.matmul %12, %4, %cst_10 {dimension_numbers = #tpu.dot_dimension_numbers<[1], [0], [0], [1], [0, 0, 1, 1], [], []>} : vector<8x128xf32>, vector<128x128xf32>, vector<8x128xf32> -> vector<8x128xf32>
    %14 = vector.broadcast %5 : vector<1x128xf32> to vector<8x128xf32>
    %15 = arith.addf %13, %14 : vector<8x128xf32>
    %cst_11 = arith.constant 0.000000e+00 : f32
    %16 = vector.broadcast %cst_11 : f32 to vector<8x128xf32>
    %17 = arith.maximumf %15, %16 : vector<8x128xf32>
    %cst_12 = arith.constant dense<0.000000e+00> : vector<8x128xf32>
    %18 = tpu.matmul %17, %6, %cst_12 {dimension_numbers = #tpu.dot_dimension_numbers<[1], [0], [0], [1], [0, 0, 1, 1], [], []>} : vector<8x128xf32>, vector<128x128xf32>, vector<8x128xf32> -> vector<8x128xf32>
    %19 = vector.broadcast %7 : vector<1x128xf32> to vector<8x128xf32>
    %20 = arith.addf %18, %19 : vector<8x128xf32>
    %cst_13 = arith.constant dense<0xFF800000> : vector<128xf32>
    %21 = vector.multi_reduction <maximumf>, %20, %cst_13 [0] : vector<8x128xf32> to vector<128xf32>
    %22 = vector.shape_cast %21 : vector<128xf32> to vector<1x128xf32>
    %23 = vector.broadcast %22 : vector<1x128xf32> to vector<8x128xf32>
    %24 = arith.subf %20, %23 : vector<8x128xf32>
    %25 = math.exp %24 : vector<8x128xf32>
    %cst_14 = arith.constant dense<0.000000e+00> : vector<128xf32>
    %26 = vector.multi_reduction <add>, %25, %cst_14 [0] : vector<8x128xf32> to vector<128xf32>
    %27 = vector.shape_cast %26 : vector<128xf32> to vector<1x128xf32>
    %28 = vector.broadcast %27 : vector<1x128xf32> to vector<8x128xf32>
    %29 = arith.divf %25, %28 : vector<8x128xf32>
    %30 = vector.extract_strided_slice %29 {offsets = [0, 0], sizes = [8, 2], strides = [1, 1]} : vector<8x128xf32> to vector<8x2xf32>
    %c0_15 = arith.constant 0 : index
    %c0_16 = arith.constant 0 : index
    %c0_17 = arith.constant 0 : index
    %31 = vector.load %arg3[%c0_15, %c0_16, %c0_17] : memref<1x8x2xf32, #tpu.memory_space<vmem>>, vector<1x8x2xf32>
    %32 = vector.shape_cast %31 : vector<1x8x2xf32> to vector<8x2xf32>
    %33 = vector.shape_cast %30 : vector<8x2xf32> to vector<1x8x2xf32>
    tpu.vector_store %arg3[%c0_15, %c0_16, %c0_17], %33 {strides = array<i32>} : memref<1x8x2xf32, #tpu.memory_space<vmem>>, vector<1x8x2xf32>,
    return
  }
  func.func @transform_0(%arg0: i32) -> (i32, i32, i32) {
    %c0_i32 = arith.constant 0 : i32
    %c0_i32_0 = arith.constant 0 : i32
    %c0_i32_1 = arith.constant 0 : i32
    return %arg0, %c0_i32, %c0_i32_0 : i32, i32, i32
  }
  func.func @transform_1(%arg0: i32) -> (i32, i32) {
    %c0_i32 = arith.constant 0 : i32
    %c0_i32_0 = arith.constant 0 : i32
    %c0_i32_1 = arith.constant 0 : i32
    return %c0_i32, %c0_i32_0 : i32, i32
  }
  func.func @transform_2(%arg0: i32) -> (i32, i32, i32) {
    %c0_i32 = arith.constant 0 : i32
    %c0_i32_0 = arith.constant 0 : i32
    %c0_i32_1 = arith.constant 0 : i32
    return %arg0, %c0_i32, %c0_i32_0 : i32, i32, i32
  }
}

</mosaic_0001>

<bundles_post_ra>
// kernel: tpu_custom_call.1
= control target key start
LH: loop header
LB: loop body
LE: loop exit
PB: predicated region body
PF: predicated region fallthrough
CT: control target
= control target key end

     0   :  { %7 = vsyncpa [#allocation3], 0  ;;  %s771_s9 = smov 0   ;;  %s853_s0 = inlined_call_operand.vmem [shape: f32[4,8,4], index: 0, kind: input, shape index: {}]   ;;  %s854_s1 = inlined_call_operand.hbm [shape: f32[288,128], index: 1, kind: input, shape index: {}]   ;;  %s855_s2 = inlined_call_operand.vmem [shape: f32[4,8,2], index: 2, kind: output, shape index: {}]  }
   0x1 LB: > { %s777_s10 = sadd.s32 4294967295, %s748_s9   ;;  %p509_p0 = scmp.ge.s32.totalorder %s748_s9, 1  ;;  %s748_s9 = sphi %s771_s9, %s13_s9  }
   0x2   : > { %p91_p1 = scmp.lt.s32.totalorder %s748_s9, 5  ;;  %s750_s11 = smov [#allocation2]  }
   0x3   : > { %s103_s12 = sshll.u32 %s750_s11, 4  ;;  %p856_p3 = scmp.eq.s32.totalorder %s777_s10, 0  ;;  %s104_s12 = int_to_ptr.vmem [resolvable:$true] %s103_s12 }
   0x4   : > { %p781_p2 = pnand %p509_p0, %p91_p1  ;;  %s710_s17 = scalar_lea.hbm %s854_s1, 4608 }
   0x5   : > { %p711_p6 = scmp.ne.s32.totalorder %s854_s1, %s710_s17  ;;  %p717_p10 = scmp.lt.u32.totalorder %s710_s17, %s854_s1 }
   0x6   : > { %s858_s13 = scalar_select %p781_p2, 1, 0 }
   0x7   : > { %p686_p4 = pneg %p781_p2 }
   0x9   : > { %p790_p5 = pnand %p856_p3, %p686_p4 }
   0xb   : > { %p712_p7 = pneg %p790_p5 }
   0xd   : > { %p713_p8 = pnand %p712_p7, %p711_p6 }
   0xf   : > { %p714_p9 = pneg %p713_p8 }
  0x11   : > { %p719_p11 = pnand %p717_p10, %p714_p9 }
  0x13   : > { %722 = shalt.err (!%p719_p11)
}
  0x14   : > { %s723_s22 = scalar_lea.vmem %s104_s12, 4608  ;;  %p731_p1 = scmp.lt.s32.totalorder %s104_s12, %s104_s12 }
  0x15   : > { %p724_p12 = scmp.ne.s32.totalorder %s104_s12, %s723_s22  ;;  %p732_p4 = scmp.lt.s32.totalorder %s723_s22, %s723_s22 }
  0x17   : > { %p726_p13 = pnand %p724_p12, %p712_p7  ;;  %p733_p3 = por %p732_p4, %p731_p1 }
  0x19   : > { %p727_p0 = pneg %p726_p13 }
  0x1b   : > { %p734_p2 = pnand %p733_p3, %p727_p0 }
  0x1d   : > { %737 = shalt.err (!%p734_p2)
}
  0x1e   : > { %s751_s23 = smov 128   ;;  %s752_s24 = smov 8  }
  0x1f   : > { %689 = dma.hbm_to_vmem [thread:$0]  (!%p790_p5), %s854_s1, 4608, %s104_s12, [#allocation3], %s751_s23, %s751_s23, %s752_s24  }
  0x20   : > { %p860_p6 = scmp.ne.s32.totalorder %s858_s13, 0 }
  0x21   : > { %p861_p8 = scmp.eq.s32.totalorder (!%p860_p6), %s777_s10, 0 }
  0x22   : > { %126 = sbr.rel (%p860_p6) target bundleno = 747 (0x2eb), region = 28 }
  0x29   : > { %743 = dma.done.wait (%p861_p8), [#allocation3], 4608   ;;  %p862_p7 = pmov %p861_p8 }
  0x2a   : > { %p146_p2 = scmp.lt.s32.totalorder %s777_s10, 3  ;;  %v753_v0 = vmov 0.0   ;;  %vm754_vm0 = vmmov 0   ;;  %v755_v1 = vmov 0.0|0.0   ;;  %vm199_vm1 = vcmask 1043456   ;;  %v157_v4 = vld [vmem:[#allocation2 + $0x10] sm:$0xff] }
  0x2b   : > { %745 = vsyncadd (%p862_p7), [#allocation3], 4294962688  ;;  %559 = vmatprep.subr.mxu0 %v753_v0  ;;  %561 = vmatprep.mubr.msk.f32.mxu0 %vm754_vm0, %v753_v0  ;;  %vm195_vm2 = vcmask 31744   ;;  %v155_v2 = vld [vmem:[#allocation2] sm:$0xf]  ;;  %v158_v5 = vld [vmem:[#allocation2 + $0x18] sm:$0xff] }
  0x2c   : > { %s864_s10 = smov (!%p146_p2, %s777_s10), 3  ;;  %634 = vmatprep.subr.bf16.mxu1 %v755_v1  ;;  %596 = vmatprep.mubr.msk.f32.mxu1 %vm754_vm0, %v753_v0  ;;  %v159_v6 = vld [vmem:[#allocation2 + $0x20] sm:$0xff]  ;;  %v160_v7 = vld [vmem:[#allocation2 + $0x28] sm:$0xff]  ;;  %v635_v8 = vpack.c.bf16 %v158_v5, %v157_v4  ;;  %v161_v10 = vld [vmem:[#allocation2 + $0x30] sm:$0xff]  ;;  %vm440_vm3 = vcmask 15360  }
  0x2d   : > { %s514_s27 = sshll.u32 %s864_s10, 3  ;;  %560 = vmatpush3.msk.msra.mxu0 %vm199_vm1, %v155_v2  ;;  %v638_v9 = vpack.c.bf16 %v160_v7, %v159_v6  ;;  %v162_v11 = vld [vmem:[#allocation2 + $0x38] sm:$0xff]  ;;  %v163_v13 = vld [vmem:[#allocation2 + $0x40] sm:$0xff]  ;;  %v164_v14 = vld [vmem:[#allocation2 + $0x48] sm:$0xff] }
  0x2e   : > { %s149_s30 = scalar_lea.vmem %s853_s0, %s514_s27  ;;  %658 = vmatprep.subr.bf16.mxu0 %v755_v1  ;;  %636 = vmatpush3.bf16.msra.mxu1 %v635_v8  ;;  %v641_v12 = vpack.c.bf16 %v162_v11, %v161_v10  ;;  %v644_v15 = vpack.c.bf16 %v164_v14, %v163_v13  ;;  %v165_v16 = vld [vmem:[#allocation2 + $0x50] sm:$0xff]  ;;  %v166_v17 = vld [vmem:[#allocation2 + $0x58] sm:$0xff]  ;;  %v167_v19 = vld [vmem:[#allocation2 + $0x60] sm:$0xff]  ;;  %s153_s5 = scalar_lea.vmem %s855_s2, %s514_s27 }
  0x2f   : > { %v154_v3 = vld [vmem:[%s149_s30] sm:$0xff]  ;;  %637 = vmatprep.subr.bf16.mxu1 %v755_v1  ;;  %v647_v18 = vpack.c.bf16 %v166_v17, %v165_v16  ;;  %v168_v20 = vld [vmem:[#allocation2 + $0x68] sm:$0xff]  ;;  %v169_v22 = vld [vmem:[#allocation2 + $0x70] sm:$0xff] }
  0x30   : > { %562 = vmatmul.mubr.msk.f32.vlgmr.msra.gmra.mrb[0].mxu0 %vm195_vm2, %v154_v3  ;;  %v650_v21 = vpack.c.bf16 %v168_v20, %v167_v19  ;;  %v170_v23 = vld [vmem:[#allocation2 + $0x78] sm:$0xff]  ;;  %v171_v25 = vld [vmem:[#allocation2 + $0x80] sm:$0xff]  ;;  %v172_v26 = vld [vmem:[#allocation2 + $0x88] sm:$0xff] }
  0x31   : > { %631 = vmatprep.mubr.msk.f32.mxu0 %vm754_vm0, %v753_v0  ;;  %v653_v24 = vpack.c.bf16 %v170_v23, %v169_v22  ;;  %v656_v27 = vpack.c.bf16 %v172_v26, %v171_v25  ;;  %v174_v28 = vld [vmem:[#allocation2 + $0x98] sm:$0xff]  ;;  %v175_v29 = vld [vmem:[#allocation2 + $0xa0] sm:$0xff]  ;;  %v176_v30 = vld [vmem:[#allocation2 + $0xa8] sm:$0xff] }
  0x32   : > { %639 = vmatpush3.bf16.msra.mxu1 %v638_v9  ;;  %v659_v31 = vpack.c.bf16 %v175_v29, %v174_v28  ;;  %v177_v32 = vld [vmem:[#allocation2 + $0xb0] sm:$0xff]  ;;  %v178_v34 = vld [vmem:[#allocation2 + $0xb8] sm:$0xff]  ;;  %v179_v35 = vld [vmem:[#allocation2 + $0xc0] sm:$0xff] }
  0x33   : > { %640 = vmatprep.subr.bf16.mxu1 %v755_v1  ;;  %v662_v33 = vpack.c.bf16 %v177_v32, %v176_v30  ;;  %v665_v36 = vpack.c.bf16 %v179_v35, %v178_v34  ;;  %v180_v37 = vld [vmem:[#allocation2 + $0xc8] sm:$0xff]  ;;  %v181_v38 = vld [vmem:[#allocation2 + $0xd0] sm:$0xff]  ;;  %v182_v40 = vld [vmem:[#allocation2 + $0xd8] sm:$0xff] }
  0x34   : > { %660 = vmatpush3.bf16.msra.mxu0 %v659_v31  ;;  %v668_v39 = vpack.c.bf16 %v181_v38, %v180_v37  ;;  %v183_v41 = vld [vmem:[#allocation2 + $0xe0] sm:$0xff]  ;;  %v184_v43 = vld [vmem:[#allocation2 + $0xe8] sm:$0xff]  ;;  %v185_v44 = vld [vmem:[#allocation2 + $0xf0] sm:$0xff] }
  0x35   : > { %661 = vmatprep.subr.bf16.mxu0 %v755_v1  ;;  %v671_v42 = vpack.c.bf16 %v183_v41, %v182_v40  ;;  %v674_v45 = vpack.c.bf16 %v185_v44, %v184_v43  ;;  %v186_v46 = vld [vmem:[#allocation2 + $0xf8] sm:$0xff]  ;;  %v187_v47 = vld [vmem:[#allocation2 + $0x100] sm:$0xff]  ;;  %v516_v49 = vld [vmem:[#allocation2 + $0x8] ss:$0 sm:$0xff] }
  0x36   : > { %642 = vmatpush3.bf16.msra.mxu1 %v641_v12  ;;  %v677_v48 = vpack.c.bf16 %v187_v47, %v186_v46  ;;  %v188_v54 = vld [vmem:[#allocation2 + $0x108] sm:$0xff]  ;;  %v189_v55 = vld [vmem:[#allocation2 + $0x110] sm:$0xff]  ;;  %v520_v62 = vld [vmem:[#allocation2 + $0x118] ss:$0 sm:$0xff] }
  0x37   : > { %643 = vmatprep.subr.bf16.mxu1 %v755_v1  ;;  %v680_v56 = vpack.c.bf16 %v189_v55, %v188_v54  ;;  %v519_v57 = vld [vmem:[#allocation2 + $0x90] ss:$0 sm:$0xff] }
  0x38   : > { %663 = vmatpush3.bf16.msra.mxu0 %v662_v33 }
  0x39   : > { %664 = vmatprep.subr.bf16.mxu0 %v755_v1 }
  0x3a   : > { %645 = vmatpush3.bf16.msra.mxu1 %v644_v15 }
  0x3b   : > { %646 = vmatprep.subr.bf16.mxu1 %v755_v1 }
  0x3c   : > { %666 = vmatpush3.bf16.msra.mxu0 %v665_v36 }
  0x3d   : > { %667 = vmatprep.subr.bf16.mxu0 %v755_v1 }
  0x3e   : > { %648 = vmatpush3.bf16.msra.mxu1 %v647_v18 }
  0x3f   : > { %649 = vmatprep.subr.bf16.mxu1 %v755_v1 }
  0x40   : > { %669 = vmatpush3.bf16.msra.mxu0 %v668_v39 }
  0x41   : > { %670 = vmatprep.subr.bf16.mxu0 %v755_v1 }
  0x42   : > { %651 = vmatpush3.bf16.msra.mxu1 %v650_v21 }
  0x43   : > { %652 = vmatprep.subr.bf16.mxu1 %v755_v1 }
  0x44   : > { %672 = vmatpush3.bf16.msra.mxu0 %v671_v42 }
  0x45   : > { %673 = vmatprep.subr.bf16.mxu0 %v755_v1 }
  0x46   : > { %654 = vmatpush3.bf16.msra.mxu1 %v653_v24 }
  0x47   : > { %655 = vmatprep.subr.bf16.mxu1 %v755_v1 }
  0x48   : > { %675 = vmatpush3.bf16.msra.mxu0 %v674_v45 }
  0x49   : > { %676 = vmatprep.subr.bf16.mxu0 %v755_v1 }
  0x4a   : > { %657 = vmatpush3.bf16.msra.mxu1 %v656_v27 }
  0x4c   : > { %678 = vmatpush3.bf16.msra.mxu0 %v677_v48 }
  0x4d   : > { %679 = vmatprep.subr.bf16.mxu0 %v755_v1 }
  0x50   : > { %681 = vmatpush3.bf16.msra.mxu0 %v680_v56 }
 0x103   : > { %v269_v50 = vpop.f32.mrb[0].mxu0 }
 0x104   : > { %v270_v51 = vadd.f32 %v516_v49, %v269_v50  ;;  %v563_v52 = vpop.f32.mrb[1].mxu0 }
 0x106   : > { %v273_v53 = vmax.f32 %v270_v51, 0.0 }
 0x108   : > { %597 = vmatmul.mubr.f32.vlgmr.msra.gmra.mrb[0].mxu1 %v273_v53 }
 0x1db   : > { %v344_v58 = vpop.f32.mrb[0].mxu1 }
 0x1dc   : > { %v345_v59 = vadd.f32 %v519_v57, %v344_v58  ;;  %v598_v60 = vpop.f32.mrb[1].mxu1 }
 0x1de   : > { %v348_v61 = vmax.f32 %v345_v59, 0.0 }
 0x1e0   : > { %632 = vmatmul.mubr.f32.vlgmr.msra.gmra.mrb[2].mxu0 %v348_v61 }
 0x2b3   : > { %v419_v63 = vpop.f32.mrb[2].mxu0 }
 0x2b4   : > { %v420_v0 = vadd.f32 %v520_v62, %v419_v63  ;;  %v633_v1 = vpop.f32.mrb[3].mxu0 }
 0x2b6   : > { %v423_v2 = vrot.slane %v420_v0, 4 }
 0x2b8   : > { %v424_v3 = vmax.f32 %v420_v0, %v423_v2 }
 0x2ba   : > { %v425_v4 = vrot.slane %v424_v3, 2 }
 0x2bc   : > { %v426_v5 = vmax.f32 %v424_v3, %v425_v4 }
 0x2be   : > { %v427_v6 = vrot.slane %v426_v5, 1 }
 0x2c0   : > { %v428_v7 = vmax.f32 %v426_v5, %v427_v6 }
 0x2c2   : > { %v429_v8 = vsub.f32 %v420_v0, %v428_v7 }
 0x2c4   : > { %v430_v9 = vmul.f32 1.442695, %v429_v8 }
 0x2c6   : > { %706 = vpow2.f32 %v430_v9 }
 0x2d0   : > { %v707_v10 = vpop.eup %706 }
 0x2d1   : > { %v432_v11 = vrot.slane %v707_v10, 4 }
 0x2d3   : > { %v433_v12 = vadd.f32 %v707_v10, %v432_v11 }
 0x2d5   : > { %v434_v13 = vrot.slane %v433_v12, 2 }
 0x2d7   : > { %v435_v14 = vadd.f32 %v434_v13, %v433_v12 }
 0x2d9   : > { %v436_v15 = vrot.slane %v435_v14, 1 }
 0x2db   : > { %v437_v16 = vadd.f32 %v436_v15, %v435_v14 }
 0x2dd   : > { %708 = vrcp.f32 %v437_v16 }
 0x2e7   : > { %v709_v17 = vpop.eup %708 }
 0x2e8   : > { %v439_v18 = vmul.f32 %v709_v17, %v707_v10 }
 0x2ea   : > { %441 = vst.msk [vmem:[%s153_s5] sm:$0xff] %vm440_vm3, %v439_v18 }
 0x2eb PF: > { %s13_s9 = sadd.s32 1, %s748_s9  }
 0x2ec   : > { %p10_p3 = scmp.ge.s32.totalorder %s13_s9, 6  }
 0x2ee   :  { %12 = sbr.rel (!%p10_p3) target bundleno = 1 (0x1), region = 63 }
 0x2f5   :  { %461 = vsyncpa [#allocation3], 1 }
 0x2f6   :  { %463 = vsyncpa [#allocation3 + $0x1], 1 }

</bundles_post_ra>
